<compile_context>
chip_gen: v7x
topology: tpu7x:2x2x1
jax: 0.10.0
libtpu: 0.0.40
codegen_flags: <defaults>
</compile_context>

<pallas_src>
import functools

import jax
import jax.numpy as jnp
from jax.experimental import pallas as pl
from jax.experimental.pallas import tpu as pltpu

IMAGE_SIZE = 28 * 28   # 784
H0 = 100
H1 = 50

# Padded feature dims (hidden lane-aligned to 128; output padded only to 64).
H0_P = 128
H1_P = 64


def _round_up(n, m):
    return ((n + m - 1) // m) * m


def _mlp_kernel(x_ref, w0_ref, b0_ref, w1_ref, b1_ref, o_ref):
    # x_ref : (TB, 784) f32       w0_ref: (784, 128) bf16   b0_ref: (1, 128) f32
    # w1_ref: (128, 64) bf16      b1_ref: (1, 64) f32       o_ref : (TB, 64) f32
    # Cast activations to bf16 in-kernel (VPU work, fully hidden under the input DMA).
    x = x_ref[...].astype(jnp.bfloat16)

    # fc0 + ReLU  (bf16 operands, f32 accumulate on the MXU)
    h0 = jnp.dot(x, w0_ref[...], preferred_element_type=jnp.float32) + b0_ref[...]
    h0 = jnp.maximum(h0, 0.0)
    # dropout(p=0.001) -> identity in eval mode

    # fc1 + ReLU
    h1 = jnp.dot(h0.astype(jnp.bfloat16), w1_ref[...],
                 preferred_element_type=jnp.float32) + b1_ref[...]
    h1 = jnp.maximum(h1, 0.0)
    # dropout(p=0.001) -> identity in eval mode

    # Mask padded logits (cols 50..63) so they do not perturb the normalization.
    col = jax.lax.broadcasted_iota(jnp.int32, h1.shape, 1)
    h1 = jnp.where(col < H1, h1, -jnp.inf)

    # log_softmax over last dim (cols 0..49 are always finite -> no NaN risk).
    m = jnp.max(h1, axis=-1, keepdims=True)
    z = h1 - m
    lse = jnp.log(jnp.sum(jnp.exp(z), axis=-1, keepdims=True))
    o_ref[...] = (z - lse).astype(o_ref.dtype)


def prepare_params(w0, b0, w1, b1):
    """One-time prep: transpose to (in, out), pad OUT dims only, cast weights to bf16.

    Inputs use PyTorch nn.Linear layout: w0 (100, 784), b0 (100,), w1 (50, 100), b1 (50,).
    """
    w0p = jnp.zeros((IMAGE_SIZE, H0_P), jnp.bfloat16)
    w0p = w0p.at[:, :H0].set(jnp.asarray(w0).T.astype(jnp.bfloat16))
    b0p = jnp.zeros((1, H0_P), jnp.float32).at[:, :H0].set(jnp.asarray(b0, jnp.float32))

    w1p = jnp.zeros((H0_P, H1_P), jnp.bfloat16)
    w1p = w1p.at[:H0, :H1].set(jnp.asarray(w1).T.astype(jnp.bfloat16))
    b1p = jnp.zeros((1, H1_P), jnp.float32).at[:, :H1].set(jnp.asarray(b1, jnp.float32))
    return w0p, b0p, w1p, b1p


def _choose_tb(batch):
    """Batch-tile size (rows, multiple of 8 for f32 sublanes).

    - Small batches (<=256): one tile.
    - Larger batches: aim for >=4 grid steps (2-TC sharding on v7x + pipelining),
      capped at 2048 rows so the f32 input double-buffer (~12.5 MiB) stays well inside
      the default 32 MiB scoped-VMEM limit on every chip (incl. v7x's 64 MiB VMEM).
    """
    if batch <= 256:
        return _round_up(max(batch, 8), 8)
    return min(2048, _round_up(pl.cdiv(batch, 4), 8))


@functools.partial(jax.jit, static_argnames=("tb", "n_blocks"))
def _mlp_call(x2, w0p, b0p, w1p, b1p, *, tb, n_blocks):
    """Run the kernel over the first n_blocks*tb rows of x2 (x2 may have extra rows)."""
    rows = n_blocks * tb
    weight_bytes = (w0p.size + w1p.size) * 2 + (b0p.size + b1p.size) * 4
    cost = pl.CostEstimate(
        flops=2 * rows * IMAGE_SIZE * H0_P + 2 * rows * H0_P * H1_P,
        transcendentals=rows * (H1_P + 1),             # exp per logit + log per row
        bytes_accessed=rows * IMAGE_SIZE * 4 + rows * H1_P * 4 + weight_bytes,
    )

    return pl.pallas_call(
        _mlp_kernel,
        out_shape=jax.ShapeDtypeStruct((rows, H1_P), jnp.float32),
        grid_spec=pltpu.PrefetchScalarGridSpec(
            num_scalar_prefetch=0,
            grid=(n_blocks,),
            in_specs=[
                # Unpadded f32 activations, batch-tiled; only in-bounds blocks are indexed.
                pl.BlockSpec((tb, IMAGE_SIZE), lambda i: (i, 0)),
                # Weights / biases stay VMEM-resident across all grid steps.
                pl.BlockSpec((IMAGE_SIZE, H0_P), lambda i: (0, 0)),
                pl.BlockSpec((1, H0_P), lambda i: (0, 0)),
                pl.BlockSpec((H0_P, H1_P), lambda i: (0, 0)),
                pl.BlockSpec((1, H1_P), lambda i: (0, 0)),
            ],
            out_specs=pl.BlockSpec((tb, H1_P), lambda i: (i, 0)),
        ),
        compiler_params=pltpu.CompilerParams(
            dimension_semantics=("parallel",),         # shard batch tiles across TCs
        ),
        cost_estimate=cost,
    )(x2, w0p, b0p, w1p, b1p)


def model_c_forward(x, w0p, b0p, w1p, b1p):
    """x: any shape reshapeable to (-1, 784); params from prepare_params().
    Returns (B, 50) log-probabilities (float32)."""
    x2 = jnp.asarray(x, jnp.float32).reshape(-1, IMAGE_SIZE)
    B = x2.shape[0]

    TB = _choose_tb(B)
    n_full = B // TB
    rem = B - n_full * TB

    outs = []
    if n_full:
        # Main call: the grid covers only the n_full full tiles of x2 — no pad, no copy.
        outs.append(_mlp_call(x2, w0p, b0p, w1p, b1p, tb=TB, n_blocks=n_full))
    if rem:
        tail_p = _round_up(rem, 8)
        if tail_p <= B:
            # Re-process the last tail_p rows (overlaps already-computed rows);
            # avoids materializing any zero-padded copy of the input.
            x_tail = x2[B - tail_p:]
        else:
            # Tiny batch (< 8 rows): zero-pad (at the front) to one 8-row sublane tile.
            x_tail = jnp.zeros((tail_p, IMAGE_SIZE), jnp.float32)
            x_tail = x_tail.at[tail_p - rem:].set(x2[n_full * TB:])
        tail_out = _mlp_call(x_tail, w0p, b0p, w1p, b1p, tb=tail_p, n_blocks=1)
        outs.append(tail_out[tail_p - rem:])

    out = outs[0] if len(outs) == 1 else jnp.concatenate(outs, axis=0)
    return out[:, :H1]


def init_params(key):
    """Deterministic init mimicking nn.Linear defaults (uniform +/- 1/sqrt(fan_in))."""
    k0w, k0b, k1w, k1b = jax.random.split(key, 4)
    lim0 = 1.0 / jnp.sqrt(jnp.float32(IMAGE_SIZE))
    lim1 = 1.0 / jnp.sqrt(jnp.float32(H0))
    w0 = jax.random.uniform(k0w, (H0, IMAGE_SIZE), jnp.float32, -lim0, lim0)
    b0 = jax.random.uniform(k0b, (H0,), jnp.float32, -lim0, lim0)
    w1 = jax.random.uniform(k1w, (H1, H0), jnp.float32, -lim1, lim1)
    b1 = jax.random.uniform(k1b, (H1,), jnp.float32, -lim1, lim1)
    return w0, b0, w1, b1


def _reference_forward(x, w0, b0, w1, b1):
    """Pure-JAX f32 reference matching the PyTorch forward (eval mode)."""
    x2 = x.reshape(-1, IMAGE_SIZE).astype(jnp.float32)
    h0 = jnp.maximum(x2 @ w0.T + b0, 0.0)
    h1 = jnp.maximum(h0 @ w1.T + b1, 0.0)
    return jax.nn.log_softmax(h1, axis=-1)


if __name__ == "__main__":
    key = jax.random.PRNGKey(0)
    kx, kp = jax.random.split(key)

    # Small batch of MNIST-like images, NCHW (2, 1, 28, 28); forward flattens to (2, 784).
    x = jax.random.normal(kx, (2, 1, 28, 28), jnp.float32)
    w0, b0, w1, b1 = init_params(kp)

    # One-time parameter preparation (transpose / pad / cast), then forward.
    params = prepare_params(w0, b0, w1, b1)
    out = model_c_forward(x, *params)
    out = jax.block_until_ready(out)

    # Sanity 1: shape and log_softmax normalization.
    assert out.shape == (2, H1)
    row_sums = jnp.sum(jnp.exp(out), axis=-1)
    assert bool(jnp.all(jnp.abs(row_sums - 1.0) < 1e-3))

    # Sanity 2: agreement with an f32 pure-JAX reference (bf16 operand tolerance).
    ref = _reference_forward(x, w0, b0, w1, b1)
    assert bool(jnp.max(jnp.abs(out - ref)) < 5e-2)

    print("KERNEL_OK")
</pallas_src>

<mosaic_0001>
module attributes {stable_mosaic.version = 11 : i64} {
  func.func @_mlp_kernel(%arg0: i32, %arg1: memref<8x784xf32, #tpu.memory_space<vmem>>, %arg2: memref<784x128xbf16, #tpu.memory_space<vmem>>, %arg3: memref<1x128xf32, #tpu.memory_space<vmem>>, %arg4: memref<128x64xbf16, #tpu.memory_space<vmem>>, %arg5: memref<1x64xf32, #tpu.memory_space<vmem>>, %arg6: memref<8x64xf32, #tpu.memory_space<vmem>>) attributes {dimension_semantics = [#tpu.dimension_semantics<parallel>], iteration_bounds = array<i64: 1>, scalar_prefetch = 0 : i64, scratch_operands = 0 : i64, tpu.core_type = #tpu.core_type<tc>, window_params = [{transform_indices = @transform_0, window_bounds = array<i64: 8, 784>}, {pipeline_mode = #tpu.pipeline_mode<synchronous>, transform_indices = @transform_1, window_bounds = array<i64: 784, 128>}, {pipeline_mode = #tpu.pipeline_mode<synchronous>, transform_indices = @transform_2, window_bounds = array<i64: 1, 128>}, {pipeline_mode = #tpu.pipeline_mode<synchronous>, transform_indices = @transform_3, window_bounds = array<i64: 128, 64>}, {pipeline_mode = #tpu.pipeline_mode<synchronous>, transform_indices = @transform_4, window_bounds = array<i64: 1, 64>}, {transform_indices = @transform_5, window_bounds = array<i64: 8, 64>}]} {
    %c0 = arith.constant 0 : index
    %c0_0 = arith.constant 0 : index
    %0 = vector.load %arg1[%c0, %c0_0] : memref<8x784xf32, #tpu.memory_space<vmem>>, vector<8x784xf32>
    %1 = arith.truncf %0 : vector<8x784xf32> to vector<8x784xbf16>
    %c0_1 = arith.constant 0 : index
    %c0_2 = arith.constant 0 : index
    %2 = vector.load %arg2[%c0_1, %c0_2] : memref<784x128xbf16, #tpu.memory_space<vmem>>, vector<784x128xbf16>
    %cst = arith.constant dense<0.000000e+00> : vector<8x128xf32>
    %3 = tpu.matmul %1, %2, %cst {dimension_numbers = #tpu.dot_dimension_numbers<[1], [0], [0], [1], [0, 0, 1, 1], [], []>} : vector<8x784xbf16>, vector<784x128xbf16>, vector<8x128xf32> -> vector<8x128xf32>
    %c0_3 = arith.constant 0 : index
    %c0_4 = arith.constant 0 : index
    %4 = vector.load %arg3[%c0_3, %c0_4] : memref<1x128xf32, #tpu.memory_space<vmem>>, vector<1x128xf32>
    %5 = vector.broadcast %4 : vector<1x128xf32> to vector<8x128xf32>
    %6 = arith.addf %3, %5 : vector<8x128xf32>
    %cst_5 = arith.constant 0.000000e+00 : f32
    %7 = vector.broadcast %cst_5 : f32 to vector<8x128xf32>
    %8 = arith.maximumf %6, %7 : vector<8x128xf32>
    %9 = arith.truncf %8 : vector<8x128xf32> to vector<8x128xbf16>
    %c0_6 = arith.constant 0 : index
    %c0_7 = arith.constant 0 : index
    %10 = vector.load %arg4[%c0_6, %c0_7] : memref<128x64xbf16, #tpu.memory_space<vmem>>, vector<128x64xbf16>
    %cst_8 = arith.constant dense<0.000000e+00> : vector<8x64xf32>
    %11 = tpu.matmul %9, %10, %cst_8 {dimension_numbers = #tpu.dot_dimension_numbers<[1], [0], [0], [1], [0, 0, 1, 1], [], []>} : vector<8x128xbf16>, vector<128x64xbf16>, vector<8x64xf32> -> vector<8x64xf32>
    %c0_9 = arith.constant 0 : index
    %c0_10 = arith.constant 0 : index
    %12 = vector.load %arg5[%c0_9, %c0_10] : memref<1x64xf32, #tpu.memory_space<vmem>>, vector<1x64xf32>
    %13 = vector.broadcast %12 : vector<1x64xf32> to vector<8x64xf32>
    %14 = arith.addf %11, %13 : vector<8x64xf32>
    %cst_11 = arith.constant 0.000000e+00 : f32
    %15 = vector.broadcast %cst_11 : f32 to vector<8x64xf32>
    %16 = arith.maximumf %14, %15 : vector<8x64xf32>
    %17 = tpu.iota {dimensions = array<i32: 1>} : vector<8x64xi32>
    %c50_i32 = arith.constant 50 : i32
    %18 = vector.broadcast %c50_i32 : i32 to vector<8x64xi32>
    %19 = arith.cmpi slt, %17, %18 : vector<8x64xi32>
    %cst_12 = arith.constant 0xFF800000 : f32
    %20 = vector.broadcast %cst_12 : f32 to vector<8x64xf32>
    %21 = arith.select %19, %16, %20 : vector<8x64xi1>, vector<8x64xf32>
    %cst_13 = arith.constant dense<0xFF800000> : vector<8xf32>
    %22 = vector.multi_reduction <maximumf>, %21, %cst_13 [1] : vector<8x64xf32> to vector<8xf32>
    %23 = vector.shape_cast %22 : vector<8xf32> to vector<8x1xf32>
    %24 = vector.broadcast %23 : vector<8x1xf32> to vector<8x64xf32>
    %25 = arith.subf %21, %24 : vector<8x64xf32>
    %26 = math.exp %25 : vector<8x64xf32>
    %cst_14 = arith.constant dense<0.000000e+00> : vector<8xf32>
    %27 = vector.multi_reduction <add>, %26, %cst_14 [1] : vector<8x64xf32> to vector<8xf32>
    %28 = vector.shape_cast %27 : vector<8xf32> to vector<8x1xf32>
    %29 = math.log %28 : vector<8x1xf32>
    %30 = vector.broadcast %29 : vector<8x1xf32> to vector<8x64xf32>
    %31 = arith.subf %25, %30 : vector<8x64xf32>
    %c0_15 = arith.constant 0 : index
    %c0_16 = arith.constant 0 : index
    %32 = vector.load %arg6[%c0_15, %c0_16] : memref<8x64xf32, #tpu.memory_space<vmem>>, vector<8x64xf32>
    tpu.vector_store %arg6[%c0_15, %c0_16], %31 {strides = array<i32>} : memref<8x64xf32, #tpu.memory_space<vmem>>, vector<8x64xf32>,
    return
  }
  func.func @transform_0(%arg0: i32) -> (i32, i32) {
    %c0_i32 = arith.constant 0 : i32
    %c0_i32_0 = arith.constant 0 : i32
    return %arg0, %c0_i32 : i32, i32
  }
  func.func @transform_1(%arg0: i32) -> (i32, i32) {
    %c0_i32 = arith.constant 0 : i32
    %c0_i32_0 = arith.constant 0 : i32
    %c0_i32_1 = arith.constant 0 : i32
    return %c0_i32, %c0_i32_0 : i32, i32
  }
  func.func @transform_2(%arg0: i32) -> (i32, i32) {
    %c0_i32 = arith.constant 0 : i32
    %c0_i32_0 = arith.constant 0 : i32
    %c0_i32_1 = arith.constant 0 : i32
    return %c0_i32, %c0_i32_0 : i32, i32
  }
  func.func @transform_3(%arg0: i32) -> (i32, i32) {
    %c0_i32 = arith.constant 0 : i32
    %c0_i32_0 = arith.constant 0 : i32
    %c0_i32_1 = arith.constant 0 : i32
    return %c0_i32, %c0_i32_0 : i32, i32
  }
  func.func @transform_4(%arg0: i32) -> (i32, i32) {
    %c0_i32 = arith.constant 0 : i32
    %c0_i32_0 = arith.constant 0 : i32
    %c0_i32_1 = arith.constant 0 : i32
    return %c0_i32, %c0_i32_0 : i32, i32
  }
  func.func @transform_5(%arg0: i32) -> (i32, i32) {
    %c0_i32 = arith.constant 0 : i32
    %c0_i32_0 = arith.constant 0 : i32
    return %arg0, %c0_i32 : i32, i32
  }
}

</mosaic_0001>

<bundles_post_ra>
// kernel: _mlp_call.1
= control target key start
LH: loop header
LB: loop body
LE: loop exit
PB: predicated region body
PF: predicated region fallthrough
CT: control target
= control target key end

     0   :  { %10 = vsyncpa [#allocation3], 0  ;;  %s1165_s0 = inlined_call_operand.vmem [shape: f32[8,784], index: 0, kind: input, shape index: {}]   ;;  %s1166_s1 = inlined_call_operand.hbm [shape: bf16[784,128], index: 1, kind: input, shape index: {}]   ;;  %s1167_s2 = inlined_call_operand.vmem [shape: f32[1,128], index: 2, kind: input, shape index: {}]   ;;  %s1168_s3 = inlined_call_operand.vmem [shape: bf16[128,64], index: 3, kind: input, shape index: {}]   ;;  %s1169_s4 = inlined_call_operand.vmem [shape: f32[1,64], index: 4, kind: input, shape index: {}]   ;;  %s1170_s5 = inlined_call_operand.hbm [shape: f32[8,64], index: 5, kind: output, shape index: {}]  }
   0x1   :  { %11 = vsyncpa [#allocation4], 0  ;;  %s1038_s18 = smov [#allocation2]   ;;  %s990_s22 = scalar_lea.hbm %s1166_s1, 6272 }
   0x2   :  { %s19_s19 = sshll.u32 %s1038_s18, 4  ;;  %p991_p0 = scmp.ne.s32.totalorder %s1166_s1, %s990_s22  ;;  %s20_s19 = int_to_ptr.vmem [resolvable:$true] %s19_s19 }
   0x3   :  { %p994_p1 = scmp.lt.u32.totalorder %s990_s22, %s1166_s1 }
   0x5   :  { %p996_p2 = pnand %p994_p1, %p991_p0 }
   0x7   :  { %999 = shalt.err (!%p996_p2)
}
   0x8   :  { %s1000_s27 = scalar_lea.vmem %s20_s19, 6272  ;;  %p1005_p4 = scmp.lt.s32.totalorder %s20_s19, %s20_s19 }
   0x9   :  { %p1001_p3 = scmp.ne.s32.totalorder %s20_s19, %s1000_s27  ;;  %p1006_p5 = scmp.lt.s32.totalorder %s1000_s27, %s1000_s27 }
   0xb   :  { %p1007_p6 = por %p1006_p5, %p1005_p4 }
   0xd   :  { %p1008_p7 = pnand %p1007_p6, %p1001_p3 }
   0xf   :  { %1011 = shalt.err (!%p1008_p7)
}
  0x10   :  { %s1039_s28 = smov 64   ;;  %s1040_s29 = smov 4  }
  0x11   :  { %25 = dma.hbm_to_vmem [thread:$0]  %s1166_s1, 6272, %s20_s19, [#allocation3], %s1039_s28, %s1039_s28, %s1040_s29  }
  0x12   :  { %1034 = dma.done.wait [#allocation3], 6272  }
  0x13   :  { %1035 = vsyncadd [#allocation3], 4294961024  ;;  %v929_v0 = vld [vmem:[#allocation2 + $0x40] sm:$0xff]   ;;  %v933_v4 = vld [vmem:[#allocation2 + $0x48] sm:$0xff]   ;;  %v1041_v44 = vmov 0.0   ;;  %vm1042_vm0 = vmmov 0  }
  0x14   :  { %v930_v1 = vld [vmem:[#allocation2] sm:$0xff]   ;;  %820 = vmatprep.subr.bf16.mxu0 %v929_v0  ;;  %v934_v5 = vld [vmem:[#allocation2 + $0x8] sm:$0xff]   ;;  %v937_v8 = vld [vmem:[#allocation2 + $0x50] sm:$0xff]   ;;  %vm449_vm1 = vcmask 130048   ;;  %vm731_vm3 = vcmask 523264  }
  0x15   :  { %v931_v2 = vld [vmem:[#allocation2 + $0xc0] sm:$0xff]   ;;  %821 = vmatpush3.bf16.msra.mxu0 %v930_v1  ;;  %v935_v6 = vld [vmem:[#allocation2 + $0xc8] sm:$0xff]   ;;  %v938_v9 = vld [vmem:[#allocation2 + $0x10] sm:$0xff]  }
  0x16   :  { %v932_v3 = vld [vmem:[#allocation2 + $0x80] sm:$0xff]   ;;  %842 = vmatprep.subr.bf16.mxu1 %v931_v2  ;;  %822 = vmatprep.subr.bf16.mxu0 %v933_v4  ;;  %v936_v7 = vld [vmem:[#allocation2 + $0x88] sm:$0xff]   ;;  %v939_v10 = vld [vmem:[#allocation2 + $0xd0] sm:$0xff]  }
  0x17   :  { %843 = vmatpush3.bf16.msra.mxu1 %v932_v3  ;;  %v940_v11 = vld [vmem:[#allocation2 + $0x90] sm:$0xff]   ;;  %v941_v12 = vld [vmem:[#allocation2 + $0x58] sm:$0xff]   ;;  %v945_v16 = vld [vmem:[#allocation2 + $0x60] sm:$0xff]  }
  0x18   :  { %844 = vmatprep.subr.bf16.mxu1 %v935_v6  ;;  %v942_v13 = vld [vmem:[#allocation2 + $0x18] sm:$0xff]   ;;  %v946_v17 = vld [vmem:[#allocation2 + $0x20] sm:$0xff]   ;;  %v949_v20 = vld [vmem:[#allocation2 + $0x68] sm:$0xff]  }
  0x19   :  { %823 = vmatpush3.bf16.msra.mxu0 %v934_v5  ;;  %v943_v14 = vld [vmem:[#allocation2 + $0xd8] sm:$0xff]   ;;  %v947_v18 = vld [vmem:[#allocation2 + $0xe0] sm:$0xff]   ;;  %v950_v21 = vld [vmem:[#allocation2 + $0x28] sm:$0xff]  }
  0x1a   :  { %824 = vmatprep.subr.bf16.mxu0 %v937_v8  ;;  %v944_v15 = vld [vmem:[#allocation2 + $0x98] sm:$0xff]   ;;  %v948_v19 = vld [vmem:[#allocation2 + $0xa0] sm:$0xff]   ;;  %v951_v22 = vld [vmem:[#allocation2 + $0xe8] sm:$0xff]  }
  0x1b   :  { %845 = vmatpush3.bf16.msra.mxu1 %v936_v7  ;;  %v952_v23 = vld [vmem:[#allocation2 + $0xa8] sm:$0xff]   ;;  %v953_v24 = vld [vmem:[#allocation2 + $0x70] sm:$0xff]   ;;  %v957_v28 = vld [vmem:[#allocation2 + $0x78] sm:$0xff]  }
  0x1c   :  { %846 = vmatprep.subr.bf16.mxu1 %v939_v10  ;;  %v954_v25 = vld [vmem:[#allocation2 + $0x30] sm:$0xff]   ;;  %v958_v29 = vld [vmem:[#allocation2 + $0x38] sm:$0xff]   ;;  %v37_v31 = vld [vmem:[%s1165_s0 + $0x8] sm:$0xff] }
  0x1d   :  { %825 = vmatpush3.bf16.msra.mxu0 %v938_v9  ;;  %v955_v26 = vld [vmem:[#allocation2 + $0xf0] sm:$0xff]   ;;  %v959_v30 = vld [vmem:[#allocation2 + $0xf8] sm:$0xff]   ;;  %v44_v32 = vpack.c.bf16 %v37_v31, %v37_v31  ;;  %v36_v34 = vld [vmem:[%s1165_s0] sm:$0xff] }
  0x1e   :  { %826 = vmatprep.subr.bf16.mxu0 %v941_v12  ;;  %v956_v27 = vld [vmem:[#allocation2 + $0xb0] sm:$0xff]   ;;  %v960_v33 = vld [vmem:[#allocation2 + $0xb8] sm:$0xff]   ;;  %v43_v35 = vpack.c.bf16 %v36_v34, %v36_v34  ;;  %v961_v36 = vld [vmem:[#allocation2 + $0x140] sm:$0xff]   ;;  %v727_v34 = vlaneseq }
  0x1f   :  { %847 = vmatpush3.bf16.msra.mxu1 %v940_v11  ;;  %v39_v37 = vld [vmem:[%s1165_s0 + $0x18] sm:$0xff]  ;;  %485 = vmatprep.mubr.bf16.mxu0 %v44_v32  ;;  %v962_v39 = vld [vmem:[#allocation2 + $0x100] sm:$0xff]   ;;  %v38_v40 = vld [vmem:[%s1165_s0 + $0x10] sm:$0xff] }
  0x20   :  { %848 = vmatprep.subr.bf16.mxu1 %v943_v14  ;;  %v46_v38 = vpack.c.bf16 %v39_v37, %v39_v37  ;;  %v45_v41 = vpack.c.bf16 %v38_v40, %v38_v40  ;;  %v963_v42 = vld [vmem:[#allocation2 + $0x148] sm:$0xff]   ;;  %v965_v45 = vld [vmem:[#allocation2 + $0x150] sm:$0xff]   ;;  %v967_v47 = vld [vmem:[#allocation2 + $0x158] sm:$0xff]  }
  0x21   :  { %827 = vmatpush3.bf16.msra.mxu0 %v942_v13  ;;  %v964_v43 = vld [vmem:[#allocation2 + $0x108] sm:$0xff]   ;;  %v966_v46 = vld [vmem:[#allocation2 + $0x110] sm:$0xff]   ;;  %v968_v48 = vld [vmem:[#allocation2 + $0x118] sm:$0xff]  }
  0x22   :  { %828 = vmatprep.subr.bf16.mxu0 %v945_v16  ;;  %525 = vmatprep.mubr.bf16.mxu1 %v46_v38  ;;  %v969_v49 = vld [vmem:[#allocation2 + $0x160] sm:$0xff]   ;;  %v971_v51 = vld [vmem:[#allocation2 + $0x168] sm:$0xff]   ;;  %v973_v55 = vld [vmem:[#allocation2 + $0x170] sm:$0xff]  }
  0x23   :  { %849 = vmatpush3.bf16.msra.mxu1 %v944_v15  ;;  %v970_v50 = vld [vmem:[#allocation2 + $0x120] sm:$0xff]   ;;  %v972_v52 = vld [vmem:[#allocation2 + $0x128] sm:$0xff]   ;;  %v42_v57 = vld [vmem:[%s1165_s0 + $0x30] sm:$0xff] }
  0x24   :  { %850 = vmatprep.subr.bf16.mxu1 %v947_v18  ;;  %v977_v53 = vld [vmem:[#allocation2 + $0x180] sm:$0xff]   ;;  %v41_v54 = vld [vmem:[%s1165_s0 + $0x28] sm:$0xff]  ;;  %v49_v58 = vpack.c.bf16 %v42_v57, %v42_v57  ;;  %v974_v59 = vld [vmem:[#allocation2 + $0x130] sm:$0xff]  }
  0x25   :  { %829 = vmatpush3.bf16.msra.mxu0 %v946_v17  ;;  %v48_v56 = vpack.c.bf16 %v41_v54, %v41_v54  ;;  %v975_v60 = vld [vmem:[#allocation2 + $0x178] sm:$0xff]   ;;  %v40_v62 = vld [vmem:[%s1165_s0 + $0x20] sm:$0xff]  ;;  %v979_v1 = vld [vmem:[%s1168_s3 + $0x8] sm:$0xff]  }
  0x26   :  { %830 = vmatprep.subr.bf16.mxu0 %v949_v20  ;;  %v976_v61 = vld [vmem:[#allocation2 + $0x138] sm:$0xff]   ;;  %v47_v63 = vpack.c.bf16 %v40_v62, %v40_v62  ;;  %v978_v0 = vld [vmem:[%s1168_s3] sm:$0xff]   ;;  %v980_v2 = vld [vmem:[%s1168_s3 + $0x10] sm:$0xff]  }
  0x27   :  { %851 = vmatpush3.bf16.msra.mxu1 %v948_v19  ;;  %v981_v3 = vld [vmem:[%s1168_s3 + $0x18] sm:$0xff]   ;;  %v982_v4 = vld [vmem:[%s1168_s3 + $0x20] sm:$0xff]   ;;  %v983_v5 = vld [vmem:[%s1168_s3 + $0x28] sm:$0xff]  }
  0x28   :  { %852 = vmatprep.subr.bf16.mxu1 %v951_v22  ;;  %v984_v6 = vld [vmem:[%s1168_s3 + $0x30] sm:$0xff]   ;;  %v985_v7 = vld [vmem:[%s1168_s3 + $0x38] sm:$0xff]   ;;  %v760_v9 = vld [vmem:[%s1167_s2] ss:$0 sm:$0xff] }
  0x29   :  { %831 = vmatpush3.bf16.msra.mxu0 %v950_v21 }
  0x2a   :  { %832 = vmatprep.subr.bf16.mxu0 %v953_v24 }
  0x2b   :  { %853 = vmatpush3.bf16.msra.mxu1 %v952_v23 }
  0x2c   :  { %854 = vmatprep.subr.bf16.mxu1 %v955_v26 }
  0x2d   :  { %833 = vmatpush3.bf16.msra.mxu0 %v954_v25 }
  0x2e   :  { %834 = vmatprep.subr.bf16.mxu0 %v957_v28 }
  0x2f   :  { %855 = vmatpush3.bf16.msra.mxu1 %v956_v27 }
  0x30   :  { %856 = vmatprep.subr.bf16.mxu1 %v959_v30 }
  0x31   :  { %835 = vmatpush3.bf16.msra.mxu0 %v958_v29 }
  0x32   :  { %864 = vmatprep.subr.bf16.mxu0 %v961_v36  ;;  %v728_v36 = vand.u32 127, %v727_v34 }
  0x33   :  { %857 = vmatpush3.bf16.msra.mxu1 %v960_v33 }
  0x34   :  { %486 = vmatmul.mubr.bf16.vlgmr.msra.gmra.mrb[0].mxu0 %v43_v35  ;;  %897 = vmatprep.subr.bf16.mxu1 %v1041_v44  ;;  %v811_v35 = vld [vmem:[%s1169_s4] ss:$0 sm:$0xff]  ;;  %vm729_vm2 = vcmp.lt.s32.totalorder %v728_v36, 50  ;;  %s1043_s4 = smov [#allocation5]  }
  0x35   :  { %865 = vmatpush3.bf16.msra.mxu0 %v962_v39  ;;  %565 = vmatprep.mubr.bf16.mxu0 %v48_v56  ;;  %s751_s11 = sshll.u32 %s1043_s4, 4  ;;  %s752_s11 = int_to_ptr.vmem [resolvable:$true] %s751_s11 }
  0x36   :  { %526 = vmatmul.mubr.bf16.vlgmr.msra.gmra.mrb[0].mxu1 %v45_v41  ;;  %866 = vmatprep.subr.bf16.mxu0 %v963_v42  ;;  %s1012_s12 = scalar_lea.vmem %s752_s11, 128  ;;  %p1017_p9 = scmp.lt.s32.totalorder %s752_s11, %s752_s11 }
  0x37   :  { %899 = vmatprep.mubr.msk.bf16.mxu1 %vm1042_vm0, %v1041_v44  ;;  %898 = vmatpush3.bf16.msra.mxu1 %v977_v53  ;;  %p1013_p8 = scmp.ne.s32.totalorder %s752_s11, %s1012_s12  ;;  %p1018_p10 = scmp.lt.s32.totalorder %s1012_s12, %s1012_s12 }
  0x38   :  { %903 = vmatprep.subr.bf16.mxu1 %v1041_v44 }
  0x39   :  { %867 = vmatpush3.bf16.msra.mxu0 %v964_v43  ;;  %p1019_p11 = por %p1018_p10, %p1017_p9 }
  0x3a   :  { %868 = vmatprep.subr.bf16.mxu0 %v965_v45 }
  0x3b   :  { %p1020_p12 = pnand %p1019_p11, %p1013_p8 }
  0x3d   :  { %869 = vmatpush3.bf16.msra.mxu0 %v966_v46 }
  0x3e   :  { %870 = vmatprep.subr.bf16.mxu0 %v967_v47  ;;  %900 = vmatmul.mubr.msk.bf16.vlgmr.msra.gmra.mrb[4].mxu1 %vm449_vm1, %v49_v58 }
  0x3f   :  { %919 = vmatprep.mubr.msk.bf16.mxu1 %vm1042_vm0, %v1041_v44  ;;  %904 = vmatpush3.bf16.msra.mxu1 %v978_v0 }
  0x40   :  { %905 = vmatprep.subr.bf16.mxu1 %v1041_v44 }
  0x41   :  { %871 = vmatpush3.bf16.msra.mxu0 %v968_v48 }
  0x42   :  { %872 = vmatprep.subr.bf16.mxu0 %v969_v49 }
  0x43   :  { %906 = vmatpush3.bf16.msra.mxu1 %v979_v1 }
  0x44   :  { %907 = vmatprep.subr.bf16.mxu1 %v1041_v44 }
  0x45   :  { %873 = vmatpush3.bf16.msra.mxu0 %v970_v50 }
  0x46   :  { %874 = vmatprep.subr.bf16.mxu0 %v971_v51 }
  0x47   :  { %908 = vmatpush3.bf16.msra.mxu1 %v980_v2 }
  0x48   :  { %909 = vmatprep.subr.bf16.mxu1 %v1041_v44 }
  0x49   :  { %875 = vmatpush3.bf16.msra.mxu0 %v972_v52 }
  0x4a   :  { %876 = vmatprep.subr.bf16.mxu0 %v973_v55 }
  0x4b   :  { %910 = vmatpush3.bf16.msra.mxu1 %v981_v3 }
  0x4c   :  { %911 = vmatprep.subr.bf16.mxu1 %v1041_v44 }
  0x4d   :  { %877 = vmatpush3.bf16.msra.mxu0 %v974_v59 }
  0x4e   :  { %878 = vmatprep.subr.bf16.mxu0 %v975_v60 }
  0x4f   :  { %912 = vmatpush3.bf16.msra.mxu1 %v982_v4 }
  0x50   :  { %913 = vmatprep.subr.bf16.mxu1 %v1041_v44 }
  0x51   :  { %879 = vmatpush3.bf16.msra.mxu0 %v976_v61 }
  0x53   :  { %914 = vmatpush3.bf16.msra.mxu1 %v983_v5 }
  0x54   :  { %566 = vmatmul.mubr.bf16.vlgmr.msra.gmra.mrb[4].mxu0 %v47_v63  ;;  %915 = vmatprep.subr.bf16.mxu1 %v1041_v44 }
  0x57   :  { %916 = vmatpush3.bf16.msra.mxu1 %v984_v6 }
  0x58   :  { %917 = vmatprep.subr.bf16.mxu1 %v1041_v44 }
  0x5b   :  { %918 = vmatpush3.bf16.msra.mxu1 %v985_v7 }
 0x107   :  { %v836_v8 = vpop.f32.mrb[0].mxu0 }
 0x108   :  { %v837_v10 = vpop.f32.mrb[1].mxu0 }
 0x109   :  { %v838_v11 = vadd.f32 %v837_v10, %v836_v8  ;;  %v839_v12 = vpop.f32.mrb[2].mxu0  ;;  %v858_v13 = vpop.f32.mrb[0].mxu1 }
 0x10a   :  { %v840_v14 = vpop.f32.mrb[3].mxu0  ;;  %v859_v16 = vpop.f32.mrb[1].mxu1 }
 0x10b   :  { %v488_v15 = vadd.f32 %v838_v11, %v760_v9  ;;  %v860_v17 = vadd.f32 %v859_v16, %v858_v13  ;;  %v861_v18 = vpop.f32.mrb[2].mxu1 }
 0x10c   :  { %v862_v19 = vpop.f32.mrb[3].mxu1 }
 0x10d   :  { %v528_v20 = vadd.f32 %v860_v17, %v488_v15 }
 0x111   :  { %v607_v21 = vpop.f32.mrb[4].mxu1 }
 0x112   :  { %v901_v22 = vpop.f32.mrb[5].mxu1 }
 0x113   :  { %v610_v23 = vpop.f32.mrb[6].mxu1 }
 0x114   :  { %v902_v24 = vpop.f32.mrb[7].mxu1 }
 0x127   :  { %v880_v25 = vpop.f32.mrb[4].mxu0 }
 0x128   :  { %v881_v26 = vpop.f32.mrb[5].mxu0 }
 0x129   :  { %v882_v27 = vadd.f32 %v881_v26, %v880_v25  ;;  %v883_v28 = vpop.f32.mrb[6].mxu0 }
 0x12a   :  { %v884_v29 = vpop.f32.mrb[7].mxu0 }
 0x12b   :  { %v568_v30 = vadd.f32 %v882_v27, %v528_v20 }
 0x12d   :  { %v608_v31 = vadd.f32 %v607_v21, %v568_v30 }
 0x12f   :  { %v613_v32 = vmax.f32 %v608_v31, 0.0 }
 0x131   :  { %v614_v33 = vpack.c.bf16 %v613_v32, %v613_v32 }
 0x133   :  { %920 = vmatmul.mubr.bf16.vlgmr.msra.gmra.mrb[8].mxu1 %v614_v33 }
 0x206   :  { %v720_v37 = vpop.f32.mrb[8].mxu1 }
 0x207   :  { %v721_v38 = vadd.f32 %v811_v35, %v720_v37  ;;  %v921_v39 = vpop.f32.mrb[9].mxu1 }
 0x208   :  { %v723_v40 = vpop.f32.mrb[10].mxu1 }
 0x209   :  { %v726_v41 = vmax.f32 %v721_v38, 0.0  ;;  %v922_v42 = vpop.f32.mrb[11].mxu1 }
 0x20b   :  { %v730_v43 = vsel %vm729_vm2, %v726_v41, -inf }
 0x20c   :  { %v732_v44 = vsel %vm731_vm3, %v730_v43, -inf }
 0x20d   :  { %733 = vmax.xlane.f32.xlu0 %v732_v44 }
 0x29a   :  { %v734_v45 = vpop.xlane.xlu0 %733 }
 0x29b   :  { %v735_v46 = vsub.f32 %v730_v43, %v734_v45 }
 0x29d   :  { %v736_v47 = vmul.f32 1.442695, %v735_v46 }
 0x29f   :  { %986 = vpow2.f32 %v736_v47 }
 0x2a9   :  { %v987_v48 = vpop.eup %986 }
 0x2aa   :  { %v738_v49 = vsel %vm731_vm3, %v987_v48, 0.0 }
 0x2ab   :  { %739 = vadd.xlane.f32.xlu0 %v738_v49 }
 0x338   :  { %v740_v50 = vpop.xlane.xlu0 %739 }
 0x339   :  { %988 = vlog2.f32 %v740_v50 }
 0x343   :  { %v989_v51 = vpop.eup %988 }
 0x344   :  { %v742_v52 = vmul.f32 0.6931472, %v989_v51 }
 0x346   :  { %v743_v53 = vsub.f32 %v735_v46, %v742_v52 }
 0x348   :  { %744 = vst.msk [vmem:[#allocation5] sm:$0xff] %vm731_vm3, %v743_v53 }
 0x349   :  { %1023 = shalt.err (!%p1020_p12)
}
 0x34a   :  { %s1024_s15 = scalar_lea.hbm %s1170_s5, 128 }
 0x34b   :  { %p1025_p13 = scmp.ne.s32.totalorder %s1170_s5, %s1024_s15  ;;  %p1028_p0 = scmp.lt.u32.totalorder %s1024_s15, %s1170_s5 }
 0x34d   :  { %p1030_p1 = pnand %p1028_p0, %p1025_p13 }
 0x34f   :  { %1033 = shalt.err (!%p1030_p1)
}
 0x350   :  { %754 = dma.vmem_to_hbm [thread:$0]  %s752_s11, 128, %s1170_s5, [#allocation4]  }
 0x351   :  { %1036 = dma.done.wait [#allocation4], 128  }
 0x352   :  { %1037 = vsyncadd [#allocation4], 4294967168 }
 0x353   :  { %758 = vsyncpa [#allocation3], 1 }
 0x354   :  { %759 = vsyncpa [#allocation4], 1 }

</bundles_post_ra>
